<compile_context>
chip_gen: v5e
topology: v5e:2x2
jax: 0.10.0
libtpu: 0.0.40
codegen_flags: <defaults>
</compile_context>

<pallas_src>
import functools
import math

import jax
import jax.numpy as jnp
from jax import lax
from jax.experimental import pallas as pl
from jax.experimental.pallas import tpu as pltpu

_LANES = 128


def _device_vmem_budget():
    """(target_tile_bytes_per_input, vmem_limit_bytes) tuned per TPU generation."""
    try:
        kind = jax.devices()[0].device_kind.lower()
    except Exception:  # pragma: no cover - defensive; fall through to conservative default
        kind = ""
    if "v5" in kind:
        # 128 MiB physical VMEM, ~820 GB/s HBM: big tiles; raise the 16 MiB scoped default.
        return 8 << 20, 64 << 20
    if "v6" in kind or "trillium" in kind:
        # 128 MiB physical VMEM, ~1.4 TB/s HBM.
        return 8 << 20, 64 << 20
    # v7x (64 MiB VMEM per TC) or unknown generation: stay conservative so
    # 2 inputs x 2 pipeline buffers x tile + output double-buffer + scratch fits comfortably.
    return 6 << 20, 44 << 20


def _choose_tile_rows(m_rows, bytes_per_elem, target_bytes):
    """Row-tile for the flattened (M, 128) view: multiple of 8, ~target_bytes per input."""
    rows = (target_bytes // (bytes_per_elem * _LANES)) // 8 * 8
    rows = max(8, rows)
    m_pad8 = -(-m_rows // 8) * 8  # M rounded up to a multiple of 8
    return min(rows, m_pad8)


def _focal_kernel(p_ref, t_ref, partial_ref, *, gamma, alpha, total, tile_rows, needs_mask):
    p = p_ref[...].astype(jnp.float32)
    t = t_ref[...].astype(jnp.float32)

    # BCE with PyTorch's clamp of log values at -100; the leading negation is folded into
    # the wrapper (one negate on the final scalar instead of one per element).
    log_p = jnp.maximum(jnp.log(p), -100.0)
    log_1mp = jnp.maximum(jnp.log(1.0 - p), -100.0)
    neg_bce = log_1mp + t * (log_p - log_1mp)            # == -(BCE)

    # 1 - p_t  =  1 - (t*p + (1-t)*(1-p))  =  p + t - 2*t*p
    m = p + t - 2.0 * (t * p)
    if gamma == 2.0:
        modulating = m * m                               # VPU only; avoids pow -> exp/log on EUP
    else:
        modulating = m ** gamma

    # t*alpha + (1-t)*(1-alpha)  ==  (1-alpha) + (2*alpha - 1)*t   (constants folded in Python)
    alpha_factor = (1.0 - alpha) + (2.0 * alpha - 1.0) * t

    vals = alpha_factor * modulating * neg_bce           # == -(per-element focal loss)

    def fold(v):
        # Fold along the leading axis only (pure vreg adds); write an (8, 128) partial block.
        return jnp.sum(v.reshape(tile_rows // 8, 8, _LANES), axis=0)

    if not needs_mask:
        partial_ref[...] = fold(vals)
    else:
        i = pl.program_id(0)
        last = pl.num_programs(0) - 1

        @pl.when(i < last)
        def _():
            partial_ref[...] = fold(vals)

        @pl.when(i == last)
        def _():
            # Flat element-index mask over the valid N*C elements.  Select AFTER the compute
            # so NaN/Inf produced by out-of-bounds / padded lanes are discarded, never summed.
            base = i * (tile_rows * _LANES)
            row_ids = lax.broadcasted_iota(jnp.int32, (tile_rows, _LANES), 0)
            lane_ids = lax.broadcasted_iota(jnp.int32, (tile_rows, _LANES), 1)
            flat_ids = base + row_ids * _LANES + lane_ids
            partial_ref[...] = fold(jnp.where(flat_ids < total, vals, 0.0))


def focal_loss(y_pred, y_true, *, gamma=2.0, alpha=0.75):
    """y_pred, y_true: same-shaped float arrays, y_pred in (0, 1). Returns scalar mean loss."""
    assert y_pred.shape == y_true.shape, (y_pred.shape, y_true.shape)
    total = math.prod(y_pred.shape)
    target_tile_bytes, vmem_limit = _device_vmem_budget()

    # Lane-dense flatten: (..., C) -> (M, 128).  Elementwise math + global sum is
    # reshape-invariant; pad values are benign (0.5 / 0.0) and masked out of the sum.
    p_flat = y_pred.reshape(-1)
    t_flat = y_true.reshape(-1)
    m_rows = pl.cdiv(total, _LANES)
    pad = m_rows * _LANES - total
    if pad:
        p_flat = jnp.pad(p_flat, (0, pad), constant_values=0.5)
        t_flat = jnp.pad(t_flat, (0, pad), constant_values=0.0)
    p2 = p_flat.reshape(m_rows, _LANES)
    t2 = t_flat.reshape(m_rows, _LANES)

    bytes_per_elem = max(p2.dtype.itemsize, t2.dtype.itemsize)
    tile_rows = _choose_tile_rows(m_rows, bytes_per_elem, target_tile_bytes)
    num_blocks = pl.cdiv(m_rows, tile_rows)
    needs_mask = (num_blocks * tile_rows * _LANES) != total

    kernel = functools.partial(
        _focal_kernel,
        gamma=gamma,
        alpha=alpha,
        total=total,
        tile_rows=tile_rows,
        needs_mask=needs_mask,
    )

    in_bytes = total * (p2.dtype.itemsize + t2.dtype.itemsize)
    partials = pl.pallas_call(
        kernel,
        out_shape=jax.ShapeDtypeStruct((num_blocks, 8, _LANES), jnp.float32),
        grid_spec=pltpu.PrefetchScalarGridSpec(
            num_scalar_prefetch=0,
            grid=(num_blocks,),
            in_specs=[
                pl.BlockSpec((tile_rows, _LANES), lambda i: (i, 0)),
                pl.BlockSpec((tile_rows, _LANES), lambda i: (i, 0)),
            ],
            out_specs=pl.BlockSpec((None, 8, _LANES), lambda i: (i, 0, 0)),
        ),
        compiler_params=pltpu.CompilerParams(
            # No resident accumulator -> grid axis is truly parallel (both TCs on v7x).
            dimension_semantics=("parallel",),
            vmem_limit_bytes=vmem_limit,
        ),
        cost_estimate=pl.CostEstimate(
            flops=15 * total,
            transcendentals=2 * total,
            bytes_accessed=in_bytes + 4 * num_blocks * 8 * _LANES,
        ),
    )(p2, t2)

    # Tiny final reduction + mean outside the kernel; BCE negation folded in here.
    return -jnp.sum(partials) / jnp.float32(total)


def _focal_loss_ref(y_pred, y_true, gamma=2.0, alpha=0.75):
    # Pure-JAX reference (mirrors the PyTorch module) for sanity checks.
    y_pred = y_pred.astype(jnp.float32)
    y_true = y_true.astype(jnp.float32)
    log_p = jnp.maximum(jnp.log(y_pred), -100.0)
    log_1mp = jnp.maximum(jnp.log(1.0 - y_pred), -100.0)
    bce = -(y_true * log_p + (1.0 - y_true) * log_1mp)
    p_t = y_true * y_pred + (1.0 - y_true) * (1.0 - y_pred)
    af = y_true * alpha + (1.0 - y_true) * (1.0 - alpha)
    mod = (1.0 - p_t) ** gamma
    return jnp.mean(af * mod * bce)


if __name__ == "__main__":
    key = jax.random.PRNGKey(0)
    k1, k2, k3, k4, k5, k6 = jax.random.split(key, 6)

    # 1) Lane-aligned shape: no masking needed, fast path only.
    N, C = 16, 128
    y_pred = jax.nn.sigmoid(jax.random.normal(k1, (N, C), dtype=jnp.float32))
    y_true = jax.random.bernoulli(k2, 0.3, (N, C)).astype(jnp.float32)
    loss = jax.block_until_ready(focal_loss(y_pred, y_true))
    ref = jax.block_until_ready(_focal_loss_ref(y_pred, y_true))
    assert jnp.allclose(loss, ref, rtol=1e-5, atol=1e-6), (loss, ref)

    # 2) C not a multiple of 128: exercises the lane-dense flatten + flat-index tail mask.
    N2, C2 = 20, 100
    y_pred2 = jax.nn.sigmoid(jax.random.normal(k3, (N2, C2), dtype=jnp.float32))
    y_true2 = jax.random.bernoulli(k4, 0.3, (N2, C2)).astype(jnp.float32)
    loss2 = jax.block_until_ready(focal_loss(y_pred2, y_true2))
    ref2 = jax.block_until_ready(_focal_loss_ref(y_pred2, y_true2))
    assert jnp.allclose(loss2, ref2, rtol=1e-5, atol=1e-6), (loss2, ref2)

    # 3) bf16 inputs (upcast to f32 inside the kernel) + rows not a multiple of 8.
    N3, C3 = 20, 128
    y_pred3 = jax.nn.sigmoid(jax.random.normal(k5, (N3, C3))).astype(jnp.bfloat16)
    y_true3 = jax.random.bernoulli(k6, 0.3, (N3, C3)).astype(jnp.bfloat16)
    loss3 = jax.block_until_ready(focal_loss(y_pred3, y_true3))
    ref3 = jax.block_until_ready(_focal_loss_ref(y_pred3, y_true3))
    assert jnp.allclose(loss3, ref3, rtol=1e-5, atol=1e-6), (loss3, ref3)

    print("KERNEL_OK")
</pallas_src>

<mosaic_0001>
module attributes {stable_mosaic.version = 11 : i64} {
  func.func @_focal_kernel(%arg0: i32, %arg1: memref<16x128xf32, #tpu.memory_space<vmem>>, %arg2: memref<16x128xf32, #tpu.memory_space<vmem>>, %arg3: memref<1x8x128xf32, #tpu.memory_space<vmem>>) attributes {dimension_semantics = [#tpu.dimension_semantics<parallel>], iteration_bounds = array<i64: 1>, scalar_prefetch = 0 : i64, scratch_operands = 0 : i64, tpu.core_type = #tpu.core_type<tc>, window_params = [{transform_indices = @transform_0, window_bounds = array<i64: 16, 128>}, {transform_indices = @transform_1, window_bounds = array<i64: 16, 128>}, {transform_indices = @transform_2, window_bounds = array<i64: 1, 8, 128>}]} {
    %c0 = arith.constant 0 : index
    %c0_0 = arith.constant 0 : index
    %0 = vector.load %arg1[%c0, %c0_0] : memref<16x128xf32, #tpu.memory_space<vmem>>, vector<16x128xf32>
    %c0_1 = arith.constant 0 : index
    %c0_2 = arith.constant 0 : index
    %1 = vector.load %arg2[%c0_1, %c0_2] : memref<16x128xf32, #tpu.memory_space<vmem>>, vector<16x128xf32>
    %2 = math.log %0 : vector<16x128xf32>
    %cst = arith.constant -1.000000e+02 : f32
    %3 = vector.broadcast %cst : f32 to vector<16x128xf32>
    %4 = arith.maximumf %2, %3 : vector<16x128xf32>
    %cst_3 = arith.constant 1.000000e+00 : f32
    %5 = vector.broadcast %cst_3 : f32 to vector<16x128xf32>
    %6 = arith.subf %5, %0 : vector<16x128xf32>
    %7 = math.log %6 : vector<16x128xf32>
    %cst_4 = arith.constant -1.000000e+02 : f32
    %8 = vector.broadcast %cst_4 : f32 to vector<16x128xf32>
    %9 = arith.maximumf %7, %8 : vector<16x128xf32>
    %10 = arith.subf %4, %9 : vector<16x128xf32>
    %11 = arith.mulf %1, %10 : vector<16x128xf32>
    %12 = arith.addf %9, %11 : vector<16x128xf32>
    %13 = arith.addf %0, %1 : vector<16x128xf32>
    %14 = arith.mulf %1, %0 : vector<16x128xf32>
    %cst_5 = arith.constant 2.000000e+00 : f32
    %15 = vector.broadcast %cst_5 : f32 to vector<16x128xf32>
    %16 = arith.mulf %15, %14 : vector<16x128xf32>
    %17 = arith.subf %13, %16 : vector<16x128xf32>
    %18 = arith.mulf %17, %17 : vector<16x128xf32>
    %cst_6 = arith.constant 5.000000e-01 : f32
    %19 = vector.broadcast %cst_6 : f32 to vector<16x128xf32>
    %20 = arith.mulf %19, %1 : vector<16x128xf32>
    %cst_7 = arith.constant 2.500000e-01 : f32
    %21 = vector.broadcast %cst_7 : f32 to vector<16x128xf32>
    %22 = arith.addf %21, %20 : vector<16x128xf32>
    %23 = arith.mulf %22, %18 : vector<16x128xf32>
    %24 = arith.mulf %23, %12 : vector<16x128xf32>
    %25 = vector.shape_cast %24 : vector<16x128xf32> to vector<2x8x128xf32>
    %cst_8 = arith.constant dense<0.000000e+00> : vector<8x128xf32>
    %26 = vector.multi_reduction <add>, %25, %cst_8 [0] : vector<2x8x128xf32> to vector<8x128xf32>
    %c0_9 = arith.constant 0 : index
    %c0_10 = arith.constant 0 : index
    %c0_11 = arith.constant 0 : index
    %27 = vector.load %arg3[%c0_9, %c0_10, %c0_11] : memref<1x8x128xf32, #tpu.memory_space<vmem>>, vector<1x8x128xf32>
    %28 = vector.shape_cast %27 : vector<1x8x128xf32> to vector<8x128xf32>
    %29 = vector.shape_cast %26 : vector<8x128xf32> to vector<1x8x128xf32>
    tpu.vector_store %arg3[%c0_9, %c0_10, %c0_11], %29 {strides = array<i32>} : memref<1x8x128xf32, #tpu.memory_space<vmem>>, vector<1x8x128xf32>,
    return
  }
  func.func @transform_0(%arg0: i32) -> (i32, i32) {
    %c0_i32 = arith.constant 0 : i32
    %c0_i32_0 = arith.constant 0 : i32
    return %arg0, %c0_i32 : i32, i32
  }
  func.func @transform_1(%arg0: i32) -> (i32, i32) {
    %c0_i32 = arith.constant 0 : i32
    %c0_i32_0 = arith.constant 0 : i32
    return %arg0, %c0_i32 : i32, i32
  }
  func.func @transform_2(%arg0: i32) -> (i32, i32, i32) {
    %c0_i32 = arith.constant 0 : i32
    %c0_i32_0 = arith.constant 0 : i32
    %c0_i32_1 = arith.constant 0 : i32
    return %arg0, %c0_i32, %c0_i32_0 : i32, i32, i32
  }
}

</mosaic_0001>

<bundles_post_ra>
// kernel: tpu_custom_call.1
= control target key start
LH: loop header
LB: loop body
LE: loop exit
PB: predicated region body
PF: predicated region fallthrough
CT: control target
= control target key end

     0   :  { %7 = vsyncpa [#allocation3], 0  ;;  %s226_s0 = inlined_call_operand.hbm [shape: f32[16,128], index: 0, kind: input, shape index: {}]   ;;  %s227_s1 = inlined_call_operand.hbm [shape: f32[16,128], index: 1, kind: input, shape index: {}]   ;;  %s228_s2 = inlined_call_operand.hbm [shape: f32[1,8,128], index: 2, kind: output, shape index: {}]  }
   0x1   :  { %8 = vsyncpa [#allocation6], 0 }
   0x2   :  { %9 = vsyncpa [#allocation4], 0  ;;  %s14_s11 = sshll.u32 %s226_s0, 4  ;;  %s197_s12 = smov [#allocation2]   ;;  %s15_s11 = int_to_ptr.hbm [resolvable:$true] %s14_s11 }
   0x3   :  { %s16_s13 = sshll.u32 %s197_s12, 4  ;;  %s27_s16 = sshll.u32 %s227_s1, 4  ;;  %s17_s13 = int_to_ptr.vmem [resolvable:$true] %s16_s13  ;;  %s28_s16 = int_to_ptr.hbm [resolvable:$true] %s27_s16 }
   0x4   :  { %s198_s17 = smov 128   ;;  %s199_s18 = smov 8  }
   0x5   :  { %22 = dma.hbm_to_vmem [thread:$0]  %s15_s11, 256, %s17_s13, [#allocation3], %s198_s17, %s198_s17, %s199_s18  }
   0x6   :  { %s200_s19 = smov [#allocation5]  }
   0x7   :  { %s29_s20 = sshll.u32 %s200_s19, 4  ;;  %s30_s20 = int_to_ptr.vmem [resolvable:$true] %s29_s20 }
   0x8   :  { %35 = dma.hbm_to_vmem [thread:$0]  %s28_s16, 256, %s30_s20, [#allocation6], %s198_s17, %s198_s17, %s199_s18  }
   0x9   :  { %191 = dma.done.wait [#allocation3], 256  }
   0xa   :  { %192 = vsyncadd [#allocation3], 4294967040 }
   0xb   :  { %193 = dma.done.wait [#allocation6], 256  }
   0xc   :  { %194 = vsyncadd [#allocation6], 4294967040  ;;  %v44_v0 = vld [vmem:[#allocation2] sm:$0xff]  ;;  %v45_v1 = vld [vmem:[#allocation2 + $0x8] sm:$0xff]  ;;  %s201_s0 = smov [#allocation7]   ;;  %s95_s23 = sshll.u32 %s228_s2, 4  ;;  %s96_s23 = int_to_ptr.hbm [resolvable:$true] %s95_s23 }
   0xd   :  { %v46_v2 = vld [vmem:[#allocation5] sm:$0xff]  ;;  %v47_v3 = vld [vmem:[#allocation5 + $0x8] sm:$0xff]  ;;  %111 = vlog2.f32 %v44_v0  ;;  %v54_v4 = vsub.f32 1.0, %v44_v0  ;;  %v55_v5 = vsub.f32 1.0, %v45_v1  ;;  %s93_s1 = sshll.u32 %s201_s0, 4  ;;  %s94_s1 = int_to_ptr.vmem [resolvable:$true] %s93_s1 }
   0xe   :  { %113 = vlog2.f32 %v45_v1  ;;  %v70_v6 = vmul.f32 %v46_v2, %v44_v0  ;;  %v71_v7 = vmul.f32 %v47_v3, %v45_v1  ;;  %v68_v8 = vadd.f32 %v46_v2, %v44_v0 }
   0xf   :  { %115 = vlog2.f32 %v54_v4  ;;  %v69_v10 = vadd.f32 %v47_v3, %v45_v1  ;;  %v78_v16 = vmul.f32 0.5, %v46_v2  ;;  %v79_v20 = vmul.f32 0.5, %v47_v3 }
  0x10   :  { %117 = vlog2.f32 %v55_v5  ;;  %v72_v9 = vmul.f32 2.0, %v70_v6  ;;  %v73_v11 = vmul.f32 2.0, %v71_v7 }
  0x11   :  { %v80_v28 = vadd.f32 0.25, %v78_v16  ;;  %v81_v31 = vadd.f32 0.25, %v79_v20 }
  0x12   :  { %v74_v15 = vsub.f32 %v68_v8, %v72_v9  ;;  %v75_v19 = vsub.f32 %v69_v10, %v73_v11 }
  0x13   :  { %v112_v12 = vpop.eup %111 }
  0x14   :  { %v114_v13 = vpop.eup %113  ;;  %v49_v14 = vmul.f32 0.6931472, %v112_v12  ;;  %v76_v27 = vmul.f32 %v74_v15, %v74_v15  ;;  %v77_v30 = vmul.f32 %v75_v19, %v75_v19 }
  0x15   :  { %v116_v17 = vpop.eup %115  ;;  %v51_v18 = vmul.f32 0.6931472, %v114_v13 }
  0x16   :  { %v118_v21 = vpop.eup %117  ;;  %v52_v22 = vmax.f32 %v49_v14, -100.0  ;;  %v57_v23 = vmul.f32 0.6931472, %v116_v17  ;;  %v82_v35 = vmul.f32 %v80_v28, %v76_v27  ;;  %v83_v37 = vmul.f32 %v81_v31, %v77_v30 }
  0x17   :  { %v53_v24 = vmax.f32 %v51_v18, -100.0  ;;  %v59_v25 = vmul.f32 0.6931472, %v118_v21 }
  0x18   :  { %v60_v26 = vmax.f32 %v57_v23, -100.0 }
  0x19   :  { %v61_v29 = vmax.f32 %v59_v25, -100.0 }
  0x1a   :  { %v62_v32 = vsub.f32 %v52_v22, %v60_v26 }
  0x1b   :  { %v63_v33 = vsub.f32 %v53_v24, %v61_v29 }
  0x1c   :  { %v64_v34 = vmul.f32 %v62_v32, %v46_v2 }
  0x1d   :  { %v65_v36 = vmul.f32 %v63_v33, %v47_v3 }
  0x1e   :  { %v66_v38 = vadd.f32 %v64_v34, %v60_v26 }
  0x1f   :  { %v67_v39 = vadd.f32 %v65_v36, %v61_v29 }
  0x20   :  { %v84_v40 = vmul.f32 %v82_v35, %v66_v38 }
  0x21   :  { %v85_v41 = vmul.f32 %v83_v37, %v67_v39 }
  0x23   :  { %v86_v42 = vadd.f32 %v85_v41, %v84_v40 }
  0x25   :  { %87 = vst [vmem:[#allocation7] sm:$0xff] %v86_v42 }
  0x26   :  { %98 = dma.vmem_to_hbm [thread:$0]  %s94_s1, 128, %s96_s23, [#allocation4]  }
  0x27   :  { %195 = dma.done.wait [#allocation4], 128  }
  0x28   :  { %196 = vsyncadd [#allocation4], 4294967168 }
  0x29   :  { %103 = vsyncpa [#allocation3], 1 }
  0x2a   :  { %104 = vsyncpa [#allocation6], 1 }
  0x2b   :  { %105 = vsyncpa [#allocation4], 1 }

</bundles_post_ra>
